<compile_context>
chip_gen: v7x
topology: tpu7x:2x2x1
jax: 0.10.0
libtpu: 0.0.40
codegen_flags: <defaults>
</compile_context>

<pallas_src>
import functools

import jax
import jax.numpy as jnp
from jax.experimental import pallas as pl
from jax.experimental.pallas import tpu as pltpu


def mlp_kernel(x_ref, w1_ref, b1_ref, w2_ref, b2_ref, w3_ref, b3_ref, o_ref):
    # x_ref: (4, TB), batch along lanes.  fc1 runs on the VPU, so upcast the
    # tiny (4, TB) tile to f32 for the accumulation regardless of input dtype.
    x = x_ref[...].astype(jnp.float32)          # (4, TB) f32
    w1 = w1_ref[...]                            # (64, 4) f32, VMEM-resident
    k_in = w1.shape[1]                          # = 4

    # fc1 on the VPU: K=4 broadcast multiply-adds, bias folded into the
    # accumulation.  (64,1) * (1,TB) broadcasts -> (64,TB); keeps the MXU free
    # for fc2 and avoids padding K=4 up to the MXU contraction depth.
    acc1 = w1[:, 0:1] * x[0:1, :] + b1_ref[...]          # (64, TB) f32
    for k in range(1, k_in):
        acc1 = acc1 + w1[:, k:k + 1] * x[k:k + 1, :]

    # tanh emitted directly in the fc2 operand dtype (bf16 on the fast path):
    # no separate f32->bf16 repack pass over the (64, TB) intermediate, and
    # bf16 EUP tanh is ~2x f32 on v6e/v7x.  With compute_dtype=f32 this stays
    # a pure-f32 path (v5e-friendly).
    h1 = jnp.tanh(acc1.astype(w2_ref.dtype))             # (64, TB)

    # fc2: (64, 64) @ (64, TB) on the MXU, f32 accumulate.
    acc2 = jnp.dot(w2_ref[...], h1, preferred_element_type=jnp.float32)
    h2 = jnp.tanh(acc2 + b2_ref[...])                    # (64, TB) f32

    # fc3 (64 -> 1) off the MXU: VPU multiply + cross-sublane (XLU) reduce.
    out = jnp.sum(h2 * w3_ref[...], axis=0, keepdims=True) + b3_ref[...]  # (1, TB)
    o_ref[...] = out.astype(o_ref.dtype)


@functools.partial(jax.jit, static_argnames=("tile_b", "compute_dtype"))
def pretrained_net_forward(x, params, *, tile_b=8192, compute_dtype=jnp.bfloat16):
    """x: (B, 4) f32. Returns (B, 1) f32, matching PretrainedNet.forward."""
    w1, b1, w2, b2, w3, b3 = params
    B = x.shape[0]
    assert x.shape[1] == w1.shape[1]
    assert tile_b >= 128 and tile_b % 128 == 0

    # Batch tile: lane-dense (multiple of 128), as large as possible up to
    # tile_b, but split so the grid has >=2 steps when the batch allows it
    # (v7x: both TensorCores get work on the "parallel" axis).
    lanes = 128
    b_units = pl.cdiv(B, lanes)                       # batch in 128-lane units
    tb_units = min(tile_b // lanes, max(1, pl.cdiv(b_units, 2)))
    TB = tb_units * lanes
    G = pl.cdiv(B, TB)
    Bp = G * TB

    # Pad batch to a whole number of tiles, transpose to feature-major (4, Bp).
    # TODO(synk): if this wrapper pad/transpose/cast shows up end-to-end,
    # produce x already transposed / in compute_dtype upstream.
    x_t = jnp.pad(x.astype(jnp.float32), ((0, Bp - B), (0, 0))).T
    x_t = x_t.astype(compute_dtype)
    w2c = w2.astype(compute_dtype)                    # only fc2 hits the MXU

    n_weight = 64 * 4 + 64 + 64 * 64 + 64 + 64 + 1
    cost = pl.CostEstimate(
        flops=2 * Bp * (4 * 64 + 64 * 64 + 64),
        transcendentals=128 * Bp,
        bytes_accessed=(Bp * 4 * jnp.dtype(compute_dtype).itemsize  # x^T read
                        + Bp * 4                                    # out write
                        + n_weight * 4),                            # weights
    )

    out = pl.pallas_call(
        mlp_kernel,
        out_shape=jax.ShapeDtypeStruct((1, Bp), jnp.float32),
        grid=(G,),
        in_specs=[
            pl.BlockSpec((4, TB), lambda i: (0, i)),        # x^T tile (pipelined)
            pl.BlockSpec((64, 4), lambda i: (0, 0)),        # W1 resident (f32)
            pl.BlockSpec((64, 1), lambda i: (0, 0)),        # b1 resident
            pl.BlockSpec((64, 64), lambda i: (0, 0)),       # W2 resident (bf16)
            pl.BlockSpec((64, 1), lambda i: (0, 0)),        # b2 resident
            pl.BlockSpec((64, 1), lambda i: (0, 0)),        # w3 column resident
            pl.BlockSpec((1, 1), lambda i: (0, 0)),         # b3 resident
        ],
        out_specs=pl.BlockSpec((1, TB), lambda i: (0, i)),  # lane-dense output
        compiler_params=pltpu.CompilerParams(
            dimension_semantics=("parallel",)),
        cost_estimate=cost,
    )(x_t, w1, b1, w2c, b2, w3, b3)

    # Back to the PyTorch (B, 1) convention (layout plumbing only).
    return out[0, :B].reshape(B, 1)


def init_params(key):
    """Deterministic init mirroring nn.Linear default U(-1/sqrt(fan_in), +1/sqrt(fan_in)).

    Weights are stored PyTorch-style (out, in); biases as (out, 1) columns;
    fc3's weight is stored as a (64, 1) column (PyTorch weight transposed).
    """
    def linear(key, fan_in, fan_out):
        kw, kb = jax.random.split(key)
        bound = 1.0 / jnp.sqrt(jnp.float32(fan_in))
        w = jax.random.uniform(kw, (fan_out, fan_in), jnp.float32, -bound, bound)
        b = jax.random.uniform(kb, (fan_out, 1), jnp.float32, -bound, bound)
        return w, b

    k1, k2, k3 = jax.random.split(key, 3)
    w1, b1 = linear(k1, 4, 64)      # (64, 4), (64, 1)
    w2, b2 = linear(k2, 64, 64)     # (64, 64), (64, 1)
    w3_row, b3 = linear(k3, 64, 1)  # (1, 64), (1, 1)
    w3 = w3_row.T                   # (64, 1) column used by the kernel
    return (w1, b1, w2, b2, w3, b3)


def _reference(x, params):
    """Plain-JAX f32 reference (high-precision dots)."""
    w1, b1, w2, b2, w3, b3 = params
    hp = jax.lax.Precision.HIGHEST
    h = jnp.tanh(jnp.dot(x, w1.T, precision=hp) + b1[:, 0])
    h = jnp.tanh(jnp.dot(h, w2.T, precision=hp) + b2[:, 0])
    return jnp.dot(h, w3, precision=hp) + b3[0, 0]


if __name__ == "__main__":
    key = jax.random.PRNGKey(0)
    kp, kx = jax.random.split(key)

    params = init_params(kp)

    # Small batch (single tile).
    x = jax.random.normal(kx, (8, 4), dtype=jnp.float32)
    ref = _reference(x, params)

    # f32 path — tight check (also the v5e / high-accuracy configuration).
    out_f32 = jax.block_until_ready(
        pretrained_net_forward(x, params, compute_dtype=jnp.float32))
    assert out_f32.shape == (8, 1)
    assert jnp.allclose(out_f32, ref, atol=5e-3, rtol=5e-3)

    # Default bf16 path (v6e/v7x fast path) — looser tolerance.
    out_bf16 = jax.block_until_ready(pretrained_net_forward(x, params))
    assert out_bf16.shape == (8, 1)
    assert jnp.allclose(out_bf16, ref, atol=3e-2, rtol=3e-2)

    # Larger, non-multiple-of-128 batch: exercises padding and a >=2-step grid.
    x2 = jax.random.normal(jax.random.PRNGKey(1), (300, 4), dtype=jnp.float32)
    ref2 = _reference(x2, params)
    out2 = jax.block_until_ready(pretrained_net_forward(x2, params))
    assert out2.shape == (300, 1)
    assert jnp.allclose(out2, ref2, atol=3e-2, rtol=3e-2)

    print("KERNEL_OK")
</pallas_src>

<mosaic_0001>
module attributes {stable_mosaic.version = 11 : i64} {
  func.func @mlp_kernel(%arg0: i32, %arg1: memref<4x128xf32, #tpu.memory_space<vmem>>, %arg2: memref<64x4xf32, #tpu.memory_space<vmem>>, %arg3: memref<64x1xf32, #tpu.memory_space<vmem>>, %arg4: memref<64x64xf32, #tpu.memory_space<vmem>>, %arg5: memref<64x1xf32, #tpu.memory_space<vmem>>, %arg6: memref<64x1xf32, #tpu.memory_space<vmem>>, %arg7: memref<1x1xf32, #tpu.memory_space<vmem>>, %arg8: memref<1x128xf32, #tpu.memory_space<vmem>>) attributes {dimension_semantics = [#tpu.dimension_semantics<parallel>], iteration_bounds = array<i64: 1>, scalar_prefetch = 0 : i64, scratch_operands = 0 : i64, tpu.core_type = #tpu.core_type<tc>, window_params = [{transform_indices = @transform_0, window_bounds = array<i64: 4, 128>}, {pipeline_mode = #tpu.pipeline_mode<synchronous>, transform_indices = @transform_1, window_bounds = array<i64: 64, 4>}, {pipeline_mode = #tpu.pipeline_mode<synchronous>, transform_indices = @transform_2, window_bounds = array<i64: 64, 1>}, {pipeline_mode = #tpu.pipeline_mode<synchronous>, transform_indices = @transform_3, window_bounds = array<i64: 64, 64>}, {pipeline_mode = #tpu.pipeline_mode<synchronous>, transform_indices = @transform_4, window_bounds = array<i64: 64, 1>}, {pipeline_mode = #tpu.pipeline_mode<synchronous>, transform_indices = @transform_5, window_bounds = array<i64: 64, 1>}, {pipeline_mode = #tpu.pipeline_mode<synchronous>, transform_indices = @transform_6, window_bounds = array<i64: 1, 1>}, {transform_indices = @transform_7, window_bounds = array<i64: 1, 128>}]} {
    %c0 = arith.constant 0 : index
    %c0_0 = arith.constant 0 : index
    %0 = vector.load %arg1[%c0, %c0_0] : memref<4x128xf32, #tpu.memory_space<vmem>>, vector<4x128xf32>
    %c0_1 = arith.constant 0 : index
    %c0_2 = arith.constant 0 : index
    %1 = vector.load %arg2[%c0_1, %c0_2] : memref<64x4xf32, #tpu.memory_space<vmem>>, vector<64x4xf32>
    %2 = vector.extract_strided_slice %1 {offsets = [0, 0], sizes = [64, 1], strides = [1, 1]} : vector<64x4xf32> to vector<64x1xf32>
    %3 = vector.extract_strided_slice %0 {offsets = [0, 0], sizes = [1, 128], strides = [1, 1]} : vector<4x128xf32> to vector<1x128xf32>
    %4 = vector.broadcast %2 : vector<64x1xf32> to vector<64x128xf32>
    %5 = vector.broadcast %3 : vector<1x128xf32> to vector<64x128xf32>
    %6 = arith.mulf %4, %5 : vector<64x128xf32>
    %c0_3 = arith.constant 0 : index
    %c0_4 = arith.constant 0 : index
    %7 = vector.load %arg3[%c0_3, %c0_4] : memref<64x1xf32, #tpu.memory_space<vmem>>, vector<64x1xf32>
    %8 = vector.broadcast %7 : vector<64x1xf32> to vector<64x128xf32>
    %9 = arith.addf %6, %8 : vector<64x128xf32>
    %10 = vector.extract_strided_slice %1 {offsets = [0, 1], sizes = [64, 1], strides = [1, 1]} : vector<64x4xf32> to vector<64x1xf32>
    %11 = vector.extract_strided_slice %0 {offsets = [1, 0], sizes = [1, 128], strides = [1, 1]} : vector<4x128xf32> to vector<1x128xf32>
    %12 = vector.broadcast %10 : vector<64x1xf32> to vector<64x128xf32>
    %13 = vector.broadcast %11 : vector<1x128xf32> to vector<64x128xf32>
    %14 = arith.mulf %12, %13 : vector<64x128xf32>
    %15 = arith.addf %9, %14 : vector<64x128xf32>
    %16 = vector.extract_strided_slice %1 {offsets = [0, 2], sizes = [64, 1], strides = [1, 1]} : vector<64x4xf32> to vector<64x1xf32>
    %17 = vector.extract_strided_slice %0 {offsets = [2, 0], sizes = [1, 128], strides = [1, 1]} : vector<4x128xf32> to vector<1x128xf32>
    %18 = vector.broadcast %16 : vector<64x1xf32> to vector<64x128xf32>
    %19 = vector.broadcast %17 : vector<1x128xf32> to vector<64x128xf32>
    %20 = arith.mulf %18, %19 : vector<64x128xf32>
    %21 = arith.addf %15, %20 : vector<64x128xf32>
    %22 = vector.extract_strided_slice %1 {offsets = [0, 3], sizes = [64, 1], strides = [1, 1]} : vector<64x4xf32> to vector<64x1xf32>
    %23 = vector.extract_strided_slice %0 {offsets = [3, 0], sizes = [1, 128], strides = [1, 1]} : vector<4x128xf32> to vector<1x128xf32>
    %24 = vector.broadcast %22 : vector<64x1xf32> to vector<64x128xf32>
    %25 = vector.broadcast %23 : vector<1x128xf32> to vector<64x128xf32>
    %26 = arith.mulf %24, %25 : vector<64x128xf32>
    %27 = arith.addf %21, %26 : vector<64x128xf32>
    %28 = math.tanh %27 : vector<64x128xf32>
    %c0_5 = arith.constant 0 : index
    %c0_6 = arith.constant 0 : index
    %29 = vector.load %arg4[%c0_5, %c0_6] : memref<64x64xf32, #tpu.memory_space<vmem>>, vector<64x64xf32>
    %cst = arith.constant dense<0.000000e+00> : vector<64x128xf32>
    %30 = tpu.matmul %29, %28, %cst {dimension_numbers = #tpu.dot_dimension_numbers<[1], [0], [0], [1], [0, 0, 1, 1], [], []>} : vector<64x64xf32>, vector<64x128xf32>, vector<64x128xf32> -> vector<64x128xf32>
    %c0_7 = arith.constant 0 : index
    %c0_8 = arith.constant 0 : index
    %31 = vector.load %arg5[%c0_7, %c0_8] : memref<64x1xf32, #tpu.memory_space<vmem>>, vector<64x1xf32>
    %32 = vector.broadcast %31 : vector<64x1xf32> to vector<64x128xf32>
    %33 = arith.addf %30, %32 : vector<64x128xf32>
    %34 = math.tanh %33 : vector<64x128xf32>
    %c0_9 = arith.constant 0 : index
    %c0_10 = arith.constant 0 : index
    %35 = vector.load %arg6[%c0_9, %c0_10] : memref<64x1xf32, #tpu.memory_space<vmem>>, vector<64x1xf32>
    %36 = vector.broadcast %35 : vector<64x1xf32> to vector<64x128xf32>
    %37 = arith.mulf %34, %36 : vector<64x128xf32>
    %cst_11 = arith.constant dense<0.000000e+00> : vector<128xf32>
    %38 = vector.multi_reduction <add>, %37, %cst_11 [0] : vector<64x128xf32> to vector<128xf32>
    %39 = vector.shape_cast %38 : vector<128xf32> to vector<1x128xf32>
    %c0_12 = arith.constant 0 : index
    %c0_13 = arith.constant 0 : index
    %40 = vector.load %arg7[%c0_12, %c0_13] : memref<1x1xf32, #tpu.memory_space<vmem>>, vector<1x1xf32>
    %41 = vector.broadcast %40 : vector<1x1xf32> to vector<1x128xf32>
    %42 = arith.addf %39, %41 : vector<1x128xf32>
    %c0_14 = arith.constant 0 : index
    %c0_15 = arith.constant 0 : index
    %43 = vector.load %arg8[%c0_14, %c0_15] : memref<1x128xf32, #tpu.memory_space<vmem>>, vector<1x128xf32>
    tpu.vector_store %arg8[%c0_14, %c0_15], %42 {strides = array<i32>} : memref<1x128xf32, #tpu.memory_space<vmem>>, vector<1x128xf32>,
    return
  }
  func.func @transform_0(%arg0: i32) -> (i32, i32) {
    %c0_i32 = arith.constant 0 : i32
    %c0_i32_0 = arith.constant 0 : i32
    return %c0_i32, %arg0 : i32, i32
  }
  func.func @transform_1(%arg0: i32) -> (i32, i32) {
    %c0_i32 = arith.constant 0 : i32
    %c0_i32_0 = arith.constant 0 : i32
    %c0_i32_1 = arith.constant 0 : i32
    return %c0_i32, %c0_i32_0 : i32, i32
  }
  func.func @transform_2(%arg0: i32) -> (i32, i32) {
    %c0_i32 = arith.constant 0 : i32
    %c0_i32_0 = arith.constant 0 : i32
    %c0_i32_1 = arith.constant 0 : i32
    return %c0_i32, %c0_i32_0 : i32, i32
  }
  func.func @transform_3(%arg0: i32) -> (i32, i32) {
    %c0_i32 = arith.constant 0 : i32
    %c0_i32_0 = arith.constant 0 : i32
    %c0_i32_1 = arith.constant 0 : i32
    return %c0_i32, %c0_i32_0 : i32, i32
  }
  func.func @transform_4(%arg0: i32) -> (i32, i32) {
    %c0_i32 = arith.constant 0 : i32
    %c0_i32_0 = arith.constant 0 : i32
    %c0_i32_1 = arith.constant 0 : i32
    return %c0_i32, %c0_i32_0 : i32, i32
  }
  func.func @transform_5(%arg0: i32) -> (i32, i32) {
    %c0_i32 = arith.constant 0 : i32
    %c0_i32_0 = arith.constant 0 : i32
    %c0_i32_1 = arith.constant 0 : i32
    return %c0_i32, %c0_i32_0 : i32, i32
  }
  func.func @transform_6(%arg0: i32) -> (i32, i32) {
    %c0_i32 = arith.constant 0 : i32
    %c0_i32_0 = arith.constant 0 : i32
    %c0_i32_1 = arith.constant 0 : i32
    return %c0_i32, %c0_i32_0 : i32, i32
  }
  func.func @transform_7(%arg0: i32) -> (i32, i32) {
    %c0_i32 = arith.constant 0 : i32
    %c0_i32_0 = arith.constant 0 : i32
    return %c0_i32, %arg0 : i32, i32
  }
}

</mosaic_0001>

<bundles_post_ra>
// kernel: pretrained_net_forward.1
= control target key start
LH: loop header
LB: loop body
LE: loop exit
PB: predicated region body
PF: predicated region fallthrough
CT: control target
= control target key end

     0   :  { %v725_v0 = vmov 2   ;;  %v726_v1 = vmov 0   ;;  %v727_v7 = vmov 1   ;;  %v728_v14 = vmov 3   ;;  %s1007_s2 = inlined_call_operand.vmem [shape: f32[64,1], index: 2, kind: input, shape index: {}]   ;;  %s1008_s1 = inlined_call_operand.vmem [shape: f32[64,4], index: 1, kind: input, shape index: {}]   ;;  %s1009_s3 = inlined_call_operand.vmem [shape: f32[64,64], index: 3, kind: input, shape index: {}]   ;;  %s1010_s4 = inlined_call_operand.vmem [shape: f32[64,1], index: 4, kind: input, shape index: {}]   ;;  %s1011_s6 = inlined_call_operand.<no memory space> [shape: f32[1,1], index: 6, kind: input, shape index: {}]   ;;  %s1012_s0 = inlined_call_operand.vmem [shape: f32[4,128], index: 0, kind: input, shape index: {}]   ;;  %s1013_s5 = inlined_call_operand.vmem [shape: f32[64,1], index: 5, kind: input, shape index: {}]   ;;  %s1014_s7 = inlined_call_operand.vmem [shape: f32[1,128], index: 7, kind: output, shape index: {}]  }
   0x1   :  { %676 = vset.pattern.permute.xlu0 %v725_v0  ;;  %668 = vset.pattern.permute.xlu1 %v726_v1  ;;  %v89_v2 = vld [vmem:[%s1007_s2] sm:$0xff]  ;;  %v31_v3 = vld [vmem:[%s1008_s1 + $0x10] sm:$0xff]  ;;  %v90_v4 = vld [vmem:[%s1007_s2 + $0x8] sm:$0xff]  ;;  %vm365_vm0 = vcmask 523264   ;;  %v12_v31 = vstv %s1011_s6  ;;  %v77_v35 = vlaneseq }
   0x2   :  { %99 = vperm.xlu1 %668, %v89_v2   ;;  %206 = vperm.xlu0 %676, %v31_v3   ;;  %v29_v5 = vld [vmem:[%s1008_s1] sm:$0xff]  ;;  %v30_v6 = vld [vmem:[%s1008_s1 + $0x8] sm:$0xff]  ;;  %v32_v8 = vld [vmem:[%s1008_s1 + $0x18] sm:$0xff]  ;;  %13 = vst [vmem:[#allocation2] sm:$0x1] %v12_v31 }
   0x3   :  { %v91_v9 = vld [vmem:[%s1007_s2 + $0x10] sm:$0xff]  ;;  %v94_v10 = vld [vmem:[%s1007_s2 + $0x28] sm:$0xff]  ;;  %v36_v11 = vld [vmem:[%s1008_s1 + $0x38] sm:$0xff]  ;;  %v875_v40 = vshrl.u32 %v77_v35, 7 }
   0x4   :  { %v92_v12 = vld [vmem:[%s1007_s2 + $0x18] sm:$0xff]  ;;  %v95_v13 = vld [vmem:[%s1007_s2 + $0x30] sm:$0xff]  ;;  %v33_v16 = vld [vmem:[%s1008_s1 + $0x20] sm:$0xff] }
   0x5   :  { %v35_v15 = vld [vmem:[%s1008_s1 + $0x30] sm:$0xff]  ;;  %v34_v17 = vld [vmem:[%s1008_s1 + $0x28] sm:$0xff]  ;;  %v93_v18 = vld [vmem:[%s1007_s2 + $0x20] sm:$0xff]  ;;  %v79_v45 = vsub.s32 0, %v875_v40  ;;  %v179_v52 = vsub.s32 1, %v875_v40  ;;  %v231_v56 = vsub.s32 2, %v875_v40 }
   0x6   :  { %104 = vperm.xlu1 %668, %v90_v4   ;;  %677 = vset.pattern.permute.xlu0 %v726_v1  ;;  %v96_v19 = vld [vmem:[%s1007_s2 + $0x38] sm:$0xff]  ;;  %v309_v24 = vld [vmem:[%s1009_s3] sm:$0xff]  ;;  %v318_v29 = vld [vmem:[%s1010_s4 + $0x8] sm:$0xff]  ;;  %v283_v62 = vsub.s32 3, %v875_v40 }
   0x7   :  { %39 = vperm.xlu0 %677, %v29_v5   ;;  %v313_v25 = vld [vmem:[%s1009_s3 + $0x20] sm:$0xff]  ;;  %628 = vmatprep.mubr.msk.f32.mxu0 %vm365_vm0, %v309_v24  ;;  %v319_v33 = vld [vmem:[%s1010_s4 + $0x10] sm:$0xff]  ;;  %v320_v34 = vld [vmem:[%s1010_s4 + $0x18] sm:$0xff] }
   0x8   :  { %634 = vmatprep.mubr.msk.f32.mxu1 %vm365_vm0, %v313_v25  ;;  %v317_v30 = vld [vmem:[%s1010_s4] sm:$0xff]  ;;  %v322_v39 = vld [vmem:[%s1010_s4 + $0x28] sm:$0xff]  ;;  %v323_v43 = vld [vmem:[%s1010_s4 + $0x30] sm:$0xff] }
   0x9   :  { %v321_v38 = vld [vmem:[%s1010_s4 + $0x20] sm:$0xff]  ;;  %v324_v44 = vld [vmem:[%s1010_s4 + $0x38] sm:$0xff]  ;;  %v504_v49 = vld [vmem:[%s1013_s5 + $0x8] sm:$0xff] }
   0xa   :  { %669 = vset.pattern.permute.xlu1 %v727_v7  ;;  %v28_v47 = vld [vmem:[%s1012_s0] sm:$0xf]  ;;  %v505_v54 = vld [vmem:[%s1013_s5 + $0x10] sm:$0xff]  ;;  %v506_v55 = vld [vmem:[%s1013_s5 + $0x18] sm:$0xff] }
   0xb   :  { %150 = vperm.xlu1 %669, %v30_v6   ;;  %44 = vperm.xlu0 %677, %v30_v6   ;;  %v503_v48 = vld [vmem:[%s1013_s5] sm:$0xff]  ;;  %v901_v51 = vrot.slane %v28_v47, %v79_v45  ;;  %v914_v58 = vrot.slane %v28_v47, %v179_v52 }
   0xc   :  { %v507_v63 = vld [vmem:[%s1013_s5 + $0x20] sm:$0xff] }
   0xf   :  { %670 = vset.pattern.permute.xlu1 %v726_v1  ;;  %54 = vperm.xlu0 %677, %v32_v8  }
  0x10   :  { %49 = vperm.xlu1 %670, %v31_v3  }
  0x13   :  { %109 = vperm.xlu0 %677, %v91_v9   ;;  %v510_v9 = vld [vmem:[%s1013_s5 + $0x38] sm:$0xff] }
  0x14   :  { %671 = vset.pattern.permute.xlu1 %v725_v0 }
  0x15   :  { %198 = vperm.xlu1 %671, %v29_v5  }
  0x17   :  { %124 = vperm.xlu0 %677, %v94_v10  }
  0x19   :  { %202 = vperm.xlu1 %671, %v30_v6  }
  0x1b   :  { %74 = vperm.xlu0 %677, %v36_v11  }
  0x1d   :  { %672 = vset.pattern.permute.xlu1 %v726_v1 }
  0x1e   :  { %114 = vperm.xlu1 %672, %v92_v12  }
  0x1f   :  { %129 = vperm.xlu0 %677, %v95_v13  }
  0x22   :  { %673 = vset.pattern.permute.xlu1 %v727_v7 }
  0x23   :  { %684 = vset.pattern.permute.xlu0 %v727_v7  ;;  %158 = vperm.xlu1 %673, %v32_v8  }
  0x24   :  { %146 = vperm.xlu0 %684, %v29_v5  }
  0x27   :  { %674 = vset.pattern.permute.xlu1 %v728_v14 }
  0x28   :  { %154 = vperm.xlu0 %684, %v31_v3   ;;  %250 = vperm.xlu1 %674, %v29_v5  }
  0x2c   :  { %170 = vperm.xlu0 %684, %v35_v15   ;;  %675 = vset.pattern.permute.xlu1 %v726_v1 }
  0x2d   :  { %59 = vperm.xlu1 %675, %v33_v16  }
  0x30   :  { %686 = vset.pattern.permute.xlu0 %v728_v14 }
  0x31   :  { %254 = vperm.xlu0 %686, %v30_v6   ;;  %64 = vperm.xlu1 %675, %v34_v17  }
  0x35   :  { %258 = vperm.xlu0 %686, %v31_v3   ;;  %678 = vset.pattern.permute.xlu1 %v725_v0 }
  0x36   :  { %210 = vperm.xlu1 %678, %v32_v8  }
  0x39   :  { %270 = vperm.xlu0 %686, %v34_v17  }
  0x3a   :  { %679 = vset.pattern.permute.xlu1 %v726_v1 }
  0x3b   :  { %119 = vperm.xlu1 %679, %v93_v18  }
  0x3d   :  { %274 = vperm.xlu0 %686, %v35_v15  }
  0x3f   :  { %680 = vset.pattern.permute.xlu1 %v727_v7 }
  0x40   :  { %162 = vperm.xlu1 %680, %v33_v16  }
  0x41   :  { %691 = vset.pattern.permute.xlu0 %v726_v1 }
  0x42   :  { %327 = vperm.xlu0 %691, %v317_v30  }
  0x44   :  { %166 = vperm.xlu1 %680, %v34_v17  }
  0x46   :  { %342 = vperm.xlu0 %691, %v320_v34  }
  0x48   :  { %681 = vset.pattern.permute.xlu1 %v728_v14 }
  0x49   :  { %262 = vperm.xlu1 %681, %v32_v8   ;;  %v509_v8 = vld [vmem:[%s1013_s5 + $0x30] sm:$0xff] }
  0x4a   :  { %352 = vperm.xlu0 %691, %v322_v39  }
  0x4d   :  { %682 = vset.pattern.permute.xlu1 %v726_v1 }
  0x4e   :  { %69 = vperm.xlu1 %682, %v35_v15   ;;  %362 = vperm.xlu0 %691, %v324_v44  }
  0x52   :  { %683 = vset.pattern.permute.xlu1 %v725_v0  ;;  %518 = vperm.xlu0 %691, %v504_v49  }
  0x53   :  { %214 = vperm.xlu1 %683, %v33_v16  }
  0x56   :  { %528 = vperm.xlu0 %691, %v506_v55  }
  0x57   :  { %218 = vperm.xlu1 %683, %v34_v17  }
  0x5b   :  { %685 = vset.pattern.permute.xlu1 %v726_v1 }
  0x5c   :  { %134 = vperm.xlu1 %685, %v96_v19  }
  0x60   :  { %687 = vset.pattern.permute.xlu1 %v727_v7  ;;  %v928_v7 = vrot.slane %v28_v47, %v283_v62 }
  0x61   :  { %174 = vperm.xlu1 %687, %v36_v11  }
  0x65   :  { %688 = vset.pattern.permute.xlu1 %v728_v14 }
  0x66   :  { %266 = vperm.xlu1 %688, %v33_v16   ;;  %v572_v16 = vld [vmem:[#allocation2] sm:$0x1] }
  0x6a   :  { %689 = vset.pattern.permute.xlu1 %v725_v0  ;;  %v508_v0 = vld [vmem:[%s1013_s5 + $0x28] sm:$0xff] }
  0x6b   :  { %222 = vperm.xlu1 %689, %v35_v15   ;;  %538 = vperm.xlu0 %691, %v508_v0  }
  0x6f   :  { %226 = vperm.xlu1 %689, %v36_v11   ;;  %548 = vperm.xlu0 %691, %v510_v9  }
  0x73   :  { %690 = vset.pattern.permute.xlu1 %v728_v14 }
  0x74   :  { %278 = vperm.xlu1 %690, %v36_v11  }
  0x78   :  { %692 = vset.pattern.permute.xlu1 %v726_v1  ;;  %v924_v1 = vrot.slane %v28_v47, %v231_v56 }
  0x79   :  { %332 = vperm.xlu1 %692, %v318_v29  }
  0x7d   :  { %337 = vperm.xlu1 %692, %v319_v33  }
  0x81   :  { %v832_v20 = vpop.permute.xlu1 %99  ;;  %v834_v21 = vpop.permute.xlu0 %206  ;;  %347 = vperm.xlu1 %692, %v321_v38  }
  0x85   :  { %v836_v22 = vpop.permute.xlu1 %104  ;;  %357 = vperm.xlu1 %692, %v323_v43   ;;  %v235_v43 = vmul.f32 %v924_v1, %v834_v21 }
  0x86   :  { %v40_v23 = vpop.permute.xlu0 %39 }
  0x87   :  { %v81_v57 = vmul.f32 %v901_v51, %v40_v23 }
  0x89   :  { %513 = vperm.xlu1 %692, %v503_v48   ;;  %v137_v2 = vadd.f32 %v832_v20, %v81_v57 }
  0x8a   :  { %v846_v26 = vpop.permute.xlu1 %150  ;;  %v45_v27 = vpop.permute.xlu0 %44 }
  0x8b   :  { %v82_v3 = vmul.f32 %v901_v51, %v45_v27  ;;  %v182_v17 = vmul.f32 %v914_v58, %v846_v26 }
  0x8d   :  { %523 = vperm.xlu1 %692, %v505_v54   ;;  %v138_v11 = vadd.f32 %v836_v22, %v82_v3 }
  0x8e   :  { %v848_v28 = vpop.permute.xlu0 %54 }
  0x8f   :  { %v859_v32 = vpop.permute.xlu1 %49  ;;  %v190_v19 = vadd.f32 %v182_v17, %v138_v11  ;;  %v84_v39 = vmul.f32 %v901_v51, %v848_v28 }
  0x90   :  { %v83_v31 = vmul.f32 %v901_v51, %v859_v32 }
  0x91   :  { %533 = vperm.xlu1 %692, %v507_v63  }
  0x92   :  { %v867_v36 = vpop.permute.xlu0 %109 }
  0x94   :  { %v199_v37 = vpop.permute.xlu1 %198 }
  0x95   :  { %v233_v10 = vmul.f32 %v924_v1, %v199_v37  ;;  %543 = vperm.xlu1 %692, %v509_v8   ;;  %v139_v37 = vadd.f32 %v867_v36, %v83_v31 }
  0x96   :  { %v877_v41 = vpop.permute.xlu0 %124 }
  0x98   :  { %v203_v42 = vpop.permute.xlu1 %202 }
  0x99   :  { %v234_v18 = vmul.f32 %v924_v1, %v203_v42  ;;  %575 = vperm.xlu1 %692, %v572_v16  }
  0x9a   :  { %v886_v46 = vpop.permute.xlu0 %74 }
  0x9b   :  { %v242_v22 = vadd.f32 %v234_v18, %v190_v19 }
  0x9d   :  { %v897_v50 = vpop.permute.xlu1 %114 }
  0x9e   :  { %v904_v53 = vpop.permute.xlu0 %129  ;;  %v140_v36 = vadd.f32 %v897_v50, %v84_v39 }
  0xa2   :  { %v159_v59 = vpop.permute.xlu1 %158 }
  0xa3   :  { %v147_v60 = vpop.permute.xlu0 %146  ;;  %v184_v32 = vmul.f32 %v914_v58, %v159_v59 }
  0xa4   :  { %v181_v61 = vmul.f32 %v914_v58, %v147_v60 }
  0xa5   :  { %v192_v28 = vadd.f32 %v184_v32, %v140_v36  ;;  %v310_v36 = vld [vmem:[%s1009_s3 + $0x8] sm:$0xff] }
  0xa6   :  { %v189_v6 = vadd.f32 %v181_v61, %v137_v2 }
  0xa7   :  { %v155_v4 = vpop.permute.xlu0 %154  ;;  %v251_v5 = vpop.permute.xlu1 %250 }
  0xa8   :  { %v241_v13 = vadd.f32 %v233_v10, %v189_v6  ;;  %v285_v14 = vmul.f32 %v928_v7, %v251_v5  ;;  %v183_v26 = vmul.f32 %v914_v58, %v155_v4 }
  0xaa   :  { %v293_v20 = vadd.f32 %v285_v14, %v241_v13  ;;  %v191_v44 = vadd.f32 %v183_v26, %v139_v37 }
  0xab   :  { %v171_v12 = vpop.permute.xlu0 %170 }
  0xac   :  { %v939_v15 = vpop.permute.xlu1 %59  ;;  %693 = vtanh.f32 %v293_v20  ;;  %v243_v52 = vadd.f32 %v235_v43, %v191_v44  ;;  %v187_v60 = vmul.f32 %v914_v58, %v171_v12 }
  0xad   :  { %v85_v12 = vmul.f32 %v901_v51, %v939_v15 }
  0xb0   :  { %v255_v23 = vpop.permute.xlu0 %254  ;;  %v65_v24 = vpop.permute.xlu1 %64 }
  0xb1   :  { %v286_v25 = vmul.f32 %v928_v7, %v255_v23  ;;  %v86_v5 = vmul.f32 %v901_v51, %v65_v24 }
  0xb3   :  { %v294_v27 = vadd.f32 %v286_v25, %v242_v22  ;;  %v142_v9 = vadd.f32 %v877_v41, %v86_v5 }
  0xb4   :  { %v259_v42 = vpop.permute.xlu0 %258 }
  0xb5   :  { %695 = vtanh.f32 %v294_v27  ;;  %v211_v29 = vpop.permute.xlu1 %210  ;;  %v287_v48 = vmul.f32 %v928_v7, %v259_v42 }
  0xb6   :  { %v694_v33 = vpop.eup %693  ;;  %v236_v49 = vmul.f32 %v924_v1, %v211_v29  ;;  %v88_v29 = vmul.f32 %v901_v51, %v886_v46 }
  0xb7   :  { %v295_v54 = vadd.f32 %v287_v48, %v243_v52  ;;  %v315_v52 = vld [vmem:[%s1009_s3 + $0x30] sm:$0xff] }
  0xb8   :  { %v244_v56 = vadd.f32 %v236_v49, %v192_v28  ;;  %v311_v49 = vld [vmem:[%s1009_s3 + $0x10] sm:$0xff]  ;;  %v312_v28 = vld [vmem:[%s1009_s3 + $0x18] sm:$0xff] }
  0xb9   :  { %697 = vtanh.f32 %v295_v54  ;;  %v316_v54 = vld [vmem:[%s1009_s3 + $0x38] sm:$0xff] }
  0xba   :  { %v120_v30 = vpop.permute.xlu1 %119 }
  0xbb   :  { %v141_v18 = vadd.f32 %v120_v30, %v85_v12 }
  0xbf   :  { %v696_v34 = vpop.eup %695  ;;  %v163_v35 = vpop.permute.xlu1 %162 }
  0xc0   :  { %v640_v38 = vpack.c.bf16 %v696_v34, %v694_v33  ;;  %v185_v13 = vmul.f32 %v914_v58, %v163_v35 }
  0xc2   :  { %641 = vmatprep.subr.bf16.mxu0 %v640_v38  ;;  %656 = vmatprep.subr.bf16.mxu1 %v640_v38  ;;  %v193_v20 = vadd.f32 %v185_v13, %v141_v18 }
  0xc3   :  { %v167_v47 = vpop.permute.xlu1 %166  ;;  %643 = vmatpush3.bf16.msra.mxu0 %v640_v38  ;;  %660 = vmatpush3.bf16.msra.mxu1 %v640_v38  ;;  %v698_v0 = vpop.eup %697 }
  0xc4   :  { %v186_v6 = vmul.f32 %v914_v58, %v167_v47 }
  0xc6   :  { %v194_v11 = vadd.f32 %v186_v6, %v142_v9 }
  0xc8   :  { %v263_v55 = vpop.permute.xlu1 %262 }
  0xc9   :  { %v288_v21 = vmul.f32 %v928_v7, %v263_v55 }
  0xcb   :  { %v296_v57 = vadd.f32 %v288_v21, %v244_v56 }
  0xcd   :  { %699 = vtanh.f32 %v296_v57  ;;  %v70_v59 = vpop.permute.xlu1 %69 }
  0xce   :  { %v87_v61 = vmul.f32 %v901_v51, %v70_v59 }
  0xd0   :  { %v143_v62 = vadd.f32 %v904_v53, %v87_v61  ;;  %v271_v53 = vpop.permute.xlu0 %270 }
  0xd1   :  { %v290_v17 = vmul.f32 %v928_v7, %v271_v53 }
  0xd2   :  { %v215_v50 = vpop.permute.xlu1 %214  ;;  %v195_v63 = vadd.f32 %v187_v60, %v143_v62 }
  0xd3   :  { %v237_v19 = vmul.f32 %v924_v1, %v215_v50 }
  0xd4   :  { %v275_v30 = vpop.permute.xlu0 %274 }
  0xd5   :  { %v245_v41 = vadd.f32 %v237_v19, %v193_v20  ;;  %v291_v37 = vmul.f32 %v928_v7, %v275_v30 }
  0xd6   :  { %v219_v2 = vpop.permute.xlu1 %218 }
  0xd7   :  { %v700_v3 = vpop.eup %699  ;;  %v238_v10 = vmul.f32 %v924_v1, %v219_v2 }
  0xd8   :  { %v644_v4 = vpack.c.bf16 %v700_v3, %v698_v0  ;;  %v328_v56 = vpop.permute.xlu0 %327 }
  0xd9   :  { %v246_v16 = vadd.f32 %v238_v10, %v194_v11 }
  0xda   :  { %645 = vmatprep.subr.bf16.mxu0 %v644_v4  ;;  %657 = vmatprep.subr.bf16.mxu1 %v644_v4 }
  0xdb   :  { %v135_v8 = vpop.permute.xlu1 %134  ;;  %647 = vmatpush3.bf16.msra.mxu0 %v644_v4  ;;  %661 = vmatpush3.bf16.msra.mxu1 %v644_v4  ;;  %v298_v23 = vadd.f32 %v290_v17, %v246_v16 }
  0xdc   :  { %v144_v34 = vadd.f32 %v135_v8, %v88_v29  ;;  %v343_v57 = vpop.permute.xlu0 %342 }
  0xdd   :  { %701 = vtanh.f32 %v298_v23 }
  0xe0   :  { %v175_v14 = vpop.permute.xlu1 %174  ;;  %v353_v60 = vpop.permute.xlu0 %352 }
  0xe1   :  { %v188_v31 = vmul.f32 %v914_v58, %v175_v14 }
  0xe3   :  { %v196_v38 = vadd.f32 %v188_v31, %v144_v34 }
  0xe4   :  { %v363_v4 = vpop.permute.xlu0 %362 }
  0xe5   :  { %v267_v24 = vpop.permute.xlu1 %266 }
  0xe6   :  { %v289_v22 = vmul.f32 %v928_v7, %v267_v24 }
  0xe7   :  { %v702_v39 = vpop.eup %701 }
  0xe8   :  { %v297_v25 = vadd.f32 %v289_v22, %v245_v41  ;;  %v519_v14 = vpop.permute.xlu0 %518 }
  0xea   :  { %703 = vtanh.f32 %v297_v25  ;;  %v223_v27 = vpop.permute.xlu1 %222 }
  0xeb   :  { %v239_v15 = vmul.f32 %v924_v1, %v223_v27 }
  0xec   :  { %v529_v41 = vpop.permute.xlu0 %528 }
  0xed   :  { %v247_v26 = vadd.f32 %v239_v15, %v195_v63 }
  0xee   :  { %v227_v33 = vpop.permute.xlu1 %226 }
  0xef   :  { %v240_v35 = vmul.f32 %v924_v1, %v227_v33  ;;  %v299_v42 = vadd.f32 %v291_v37, %v247_v26 }
  0xf0   :  { %v539_v34 = vpop.permute.xlu0 %538 }
  0xf1   :  { %v248_v32 = vadd.f32 %v240_v35, %v196_v38  ;;  %705 = vtanh.f32 %v299_v42 }
  0xf3   :  { %v279_v43 = vpop.permute.xlu1 %278 }
  0xf4   :  { %v704_v44 = vpop.eup %703  ;;  %v292_v47 = vmul.f32 %v928_v7, %v279_v43  ;;  %v314_v7 = vld [vmem:[%s1009_s3 + $0x28] sm:$0xff] }
  0xf5   :  { %v648_v48 = vpack.c.bf16 %v702_v39, %v704_v44 }
  0xf6   :  { %v300_v46 = vadd.f32 %v292_v47, %v248_v32 }
  0xf7   :  { %649 = vmatprep.subr.bf16.mxu0 %v648_v48  ;;  %658 = vmatprep.subr.bf16.mxu1 %v648_v48 }
  0xf8   :  { %707 = vtanh.f32 %v300_v46  ;;  %651 = vmatpush3.bf16.msra.mxu0 %v648_v48  ;;  %662 = vmatpush3.bf16.msra.mxu1 %v648_v48  ;;  %v333_v55 = vpop.permute.xlu1 %332  ;;  %v549_v48 = vpop.permute.xlu0 %548 }
  0xfb   :  { %v706_v51 = vpop.eup %705 }
  0xfc   :  { %v338_v21 = vpop.permute.xlu1 %337 }
 0x100   :  { %v348_v59 = vpop.permute.xlu1 %347 }
 0x102   :  { %v708_v58 = vpop.eup %707 }
 0x103   :  { %v652_v1 = vpack.c.bf16 %v708_v58, %v706_v51 }
 0x104   :  { %v358_v3 = vpop.permute.xlu1 %357 }
 0x105   :  { %653 = vmatprep.subr.bf16.mxu0 %v652_v1  ;;  %659 = vmatprep.subr.bf16.mxu1 %v652_v1 }
 0x106   :  { %655 = vmatpush3.bf16.msra.mxu0 %v652_v1  ;;  %663 = vmatpush3.bf16.msra.mxu1 %v652_v1 }
 0x108   :  { %v514_v12 = vpop.permute.xlu1 %513 }
 0x109   :  { %629 = vmatmul.mubr.msk.f32.vlgmr.msra.gmra.mrb[0].mxu0 %vm365_vm0, %v310_v36  ;;  %635 = vmatmul.mubr.msk.f32.vlgmr.msra.gmra.mrb[0].mxu1 %vm365_vm0, %v314_v7 }
 0x10a   :  { %631 = vmatprep.mubr.msk.f32.mxu0 %vm365_vm0, %v311_v49  ;;  %637 = vmatprep.mubr.msk.f32.mxu1 %vm365_vm0, %v315_v52 }
 0x10c   :  { %v524_v23 = vpop.permute.xlu1 %523 }
 0x10d   :  { %632 = vmatmul.mubr.msk.f32.gmra.mrb[2].mxu0 %vm365_vm0, %v312_v28  ;;  %638 = vmatmul.mubr.msk.f32.gmra.mrb[2].mxu1 %vm365_vm0, %v316_v54 }
 0x110   :  { %v534_v31 = vpop.permute.xlu1 %533 }
 0x114   :  { %v544_v44 = vpop.permute.xlu1 %543 }
 0x118   :  { %v576_v52 = vpop.permute.xlu1 %575 }
 0x119   :  { %v581_v54 = vrot.slane %v576_v52, %v79_v45 }
 0x1dc   :  { %v630_v61 = vpop.f32.mrb[0].mxu0  ;;  %v636_v62 = vpop.f32.mrb[0].mxu1 }
 0x1dd   :  { %v462_v50 = vadd.f32 %v630_v61, %v333_v55  ;;  %v456_v63 = vpop.f32.mrb[1].mxu0  ;;  %v476_v0 = vpop.f32.mrb[1].mxu1  ;;  %v482_v13 = vadd.f32 %v636_v62, %v353_v60 }
 0x1de   :  { %v457_v2 = vadd.f32 %v456_v63, %v328_v56  ;;  %v477_v11 = vadd.f32 %v476_v0, %v348_v59 }
 0x1df   :  { %709 = vtanh.f32 %v462_v50 }
 0x1e0   :  { %v633_v5 = vpop.f32.mrb[2].mxu0  ;;  %v639_v6 = vpop.f32.mrb[2].mxu1  ;;  %711 = vtanh.f32 %v457_v2 }
 0x1e1   :  { %v472_v8 = vadd.f32 %v633_v5, %v343_v57  ;;  %v466_v9 = vpop.f32.mrb[3].mxu0  ;;  %v486_v10 = vpop.f32.mrb[3].mxu1  ;;  %v492_v18 = vadd.f32 %v639_v6, %v363_v4 }
 0x1e2   :  { %v467_v53 = vadd.f32 %v466_v9, %v338_v21  ;;  %v487_v16 = vadd.f32 %v486_v10, %v358_v3 }
 0x1e3   :  { %713 = vtanh.f32 %v472_v8 }
 0x1e4   :  { %715 = vtanh.f32 %v467_v53 }
 0x1e5   :  { %717 = vtanh.f32 %v477_v11 }
 0x1e6   :  { %719 = vtanh.f32 %v482_v13 }
 0x1e7   :  { %721 = vtanh.f32 %v487_v16 }
 0x1e8   :  { %723 = vtanh.f32 %v492_v18 }
 0x1e9   :  { %v710_v17 = vpop.eup %709 }
 0x1ea   :  { %v552_v19 = vmul.f32 %v710_v17, %v519_v14  ;;  %v712_v20 = vpop.eup %711 }
 0x1eb   :  { %v551_v24 = vmul.f32 %v712_v20, %v514_v12 }
 0x1ed   :  { %v714_v22 = vpop.eup %713  ;;  %v559_v25 = vadd.f32 %v552_v19, %v551_v24 }
 0x1ee   :  { %v716_v27 = vpop.eup %715  ;;  %v554_v30 = vmul.f32 %v714_v22, %v529_v41 }
 0x1ef   :  { %v553_v15 = vmul.f32 %v716_v27, %v524_v23  ;;  %v718_v29 = vpop.eup %717 }
 0x1f0   :  { %v720_v26 = vpop.eup %719  ;;  %v555_v35 = vmul.f32 %v718_v29, %v534_v31 }
 0x1f1   :  { %v560_v33 = vadd.f32 %v559_v25, %v553_v15  ;;  %v722_v38 = vpop.eup %721  ;;  %v556_v39 = vmul.f32 %v720_v26, %v539_v34 }
 0x1f2   :  { %v724_v43 = vpop.eup %723  ;;  %v557_v32 = vmul.f32 %v722_v38, %v544_v44 }
 0x1f3   :  { %v561_v37 = vadd.f32 %v560_v33, %v554_v30  ;;  %v558_v46 = vmul.f32 %v724_v43, %v549_v48 }
 0x1f5   :  { %v562_v42 = vadd.f32 %v561_v37, %v555_v35 }
 0x1f7   :  { %v563_v47 = vadd.f32 %v562_v42, %v556_v39 }
 0x1f9   :  { %v564_v51 = vadd.f32 %v563_v47, %v557_v32 }
 0x1fb   :  { %v565_v58 = vadd.f32 %v564_v51, %v558_v46 }
 0x1fd   :  { %v566_v1 = vrot.slane %v565_v58, 4 }
 0x1ff   :  { %v567_v36 = vadd.f32 %v566_v1, %v565_v58 }
 0x201   :  { %v568_v7 = vrot.slane %v567_v36, 2 }
 0x203   :  { %v569_v49 = vadd.f32 %v568_v7, %v567_v36 }
 0x205   :  { %v570_v28 = vrot.slane %v569_v49, 1 }
 0x207   :  { %v571_v55 = vadd.f32 %v570_v28, %v569_v49 }
 0x209   :  { %v582_v56 = vadd.f32 %v581_v54, %v571_v55 }
 0x20b   :  { %583 = vst [vmem:[%s1014_s7] sm:$0x1] %v582_v56 }

</bundles_post_ra>
